<compile_context>
chip_gen: v5e
topology: v5e:2x2
jax: 0.10.0
libtpu: 0.0.40
codegen_flags: <defaults>
</compile_context>

<pallas_src>
import functools

import jax
import jax.numpy as jnp
from jax.experimental import pallas as pl
from jax.experimental.pallas import tpu as pltpu


# ---------------------------------------------------------------------------
# Kernels
# ---------------------------------------------------------------------------

def _tsoftmax_rowmajor_kernel(x_ref, o_ref, *, inv_T):
    """Stable softmax over the last (lane) axis of a (tile_rows, feat) block."""
    xs = x_ref[...].astype(jnp.float32) * inv_T
    m = jnp.max(xs, axis=-1, keepdims=True)
    e = jnp.exp(xs - m)
    s = jnp.sum(e, axis=-1, keepdims=True)
    o_ref[...] = (e * pl.reciprocal(s, approx=True)).astype(o_ref.dtype)


def _tsoftmax_packed_kernel(x_ref, seg_ones_ref, o_ref, *, inv_T, feat):
    """Lane-dense softmax for small power-of-two feature dims.

    The wrapper packs G = 128 // feat softmax rows into each 128-wide lane row
    (a free reshape).  The per-segment MAX is a log2(feat) lane-roll tree +
    log2(feat) roll/select broadcast (XLU + VPU).  The per-segment SUM (already
    broadcast to every lane of its segment) is offloaded to the otherwise-idle
    MXU as e @ B with B a 128x128 block-diagonal ones matrix, which keeps the
    packed path HBM-bound on v7x.  All mixing stays within a lane row, so
    ragged / padded blocks never contaminate valid rows.
    """
    xs = x_ref[...].astype(jnp.float32) * inv_T    # (tile_rows, 128)
    n = xs.shape[-1]                               # 128
    lane_mod = jax.lax.broadcasted_iota(jnp.int32, xs.shape, 1) % feat

    # --- per-segment max, broadcast to every lane of its segment -----------
    r = xs
    k = 1
    while k < feat:                                # down-sweep
        r = jnp.maximum(r, pltpu.roll(r, n - k, axis=1))   # r[j] = max(r[j], r[j+k])
        k *= 2
    k = 1
    while k < feat:                                # broadcast from segment start
        r = jnp.where(lane_mod >= k, pltpu.roll(r, k, axis=1), r)
        k *= 2
    m = r

    e = jnp.exp(xs - m)
    # --- per-segment sum via MXU (block-diagonal ones), broadcast for free --
    s = jnp.dot(e, seg_ones_ref[...], preferred_element_type=jnp.float32)
    o_ref[...] = (e * pl.reciprocal(s, approx=True)).astype(o_ref.dtype)


# ---------------------------------------------------------------------------
# Tiling / wrapper
# ---------------------------------------------------------------------------

def _chip_budgets():
    """(vmem_limit_bytes, target_tile_bytes) derived from the chip generation."""
    vmem_bytes = None
    try:
        info = pltpu.get_tpu_info()
        vmem_bytes = getattr(info, "vmem_capacity_bytes", None)
    except Exception:
        vmem_bytes = None
    if vmem_bytes is None:
        vmem_bytes = 64 * 1024 * 1024            # conservative (v7x per-TC)
    if vmem_bytes >= 96 * 1024 * 1024:
        # v5e / v6e: 128 MiB physical VMEM -> bigger tiles, higher scoped limit.
        return 64 * 1024 * 1024, 6 * 1024 * 1024
    # v7x: 64 MiB physical per TensorCore -> keep the budget modest.
    return 32 * 1024 * 1024, 2 * 1024 * 1024


def _pick_tile_rows(rows, feat, dtype, target_bytes):
    """VMEM-budgeted, balanced row tile.

    - Tile rows are a multiple of the sublane packing granularity
      (8 for >=32-bit, 16 for 16-bit, 32 for 8-bit dtypes).
    - Arrays large enough to matter get >= 4 roughly-equal grid steps so
      v7x's two TensorCores each run >= 2 pipelined (double-buffered) blocks.
    - Tiny arrays keep a single full-extent block.
    """
    itemsize = jnp.dtype(dtype).itemsize
    mult = 8 if itemsize >= 4 else (16 if itemsize == 2 else 32)
    if rows <= mult:
        return rows                                # single (full-extent) block

    bytes_per_row = max(int(feat), 1) * 4          # f32 compute temporaries
    tr_max = (target_bytes // bytes_per_row) // mult * mult
    tr_max = max(mult, min(tr_max, 4096))

    # Only force a multi-step, balanced grid when the array is big enough
    # that pipelining / megacore sharding beats the ~0.35 us per-step cost.
    big_enough = rows * bytes_per_row >= (512 << 10) and rows >= 4 * mult
    min_steps = 4 if big_enough else 1

    steps = max(pl.cdiv(rows, tr_max), min_steps)
    if steps <= 1:
        return rows                                # fits budget in one block
    tr = -(-rows // steps)                         # ceil(rows / steps)
    tr = ((tr + mult - 1) // mult) * mult
    return max(mult, min(tr, tr_max))


def tsoftmax(x, T=1.0, dim=-1):
    """softmax(x * (1/T), axis=dim) — Pallas TPU implementation."""
    inv_T = 1.0 / float(T)

    ndim = x.ndim
    dim = dim % ndim
    perm = None
    if dim != ndim - 1:
        # TODO(synk): handle a non-trailing softmax axis in-kernel (sublane
        # reduction / per-tile XLU transpose) instead of paying two full-HBM
        # wrapper transposes (~3x HBM traffic for this case).
        perm = tuple(i for i in range(ndim) if i != dim) + (dim,)
        x = jnp.transpose(x, perm)

    orig_shape = x.shape
    feat = int(orig_shape[-1])
    rows = 1
    for d in orig_shape[:-1]:
        rows *= int(d)

    if rows == 0 or feat == 0:
        out = x
        if perm is not None:
            inv_perm = tuple(perm.index(i) for i in range(ndim))
            out = jnp.transpose(out, inv_perm)
        return out

    vmem_limit, target_bytes = _chip_budgets()
    compiler_params = pltpu.CompilerParams(
        dimension_semantics=("parallel",),
        vmem_limit_bytes=vmem_limit,
    )

    # Lane-dense packed path for small power-of-two feature dims (incl. 64).
    group = 128 // feat if (feat > 0 and 128 % feat == 0) else 0
    use_packed = (
        1 <= feat <= 64
        and 128 % feat == 0
        and group > 0
        and rows % group == 0
    )

    if use_packed:
        rows_p = rows // group
        x2 = x.reshape(rows_p, 128)                # free view: `group` rows / lane-row
        tr = _pick_tile_rows(rows_p, 128, x.dtype, target_bytes)
        grid = (pl.cdiv(rows_p, tr),)

        # 128x128 block-diagonal ones matrix for the MXU segment-sum.
        li = jnp.arange(128, dtype=jnp.int32)[:, None] // feat
        lj = jnp.arange(128, dtype=jnp.int32)[None, :] // feat
        seg_ones = (li == lj).astype(jnp.float32)

        kern = functools.partial(_tsoftmax_packed_kernel, inv_T=inv_T, feat=feat)
        out2 = pl.pallas_call(
            kern,
            out_shape=jax.ShapeDtypeStruct((rows_p, 128), x2.dtype),
            grid_spec=pltpu.PrefetchScalarGridSpec(
                num_scalar_prefetch=0,
                grid=grid,
                in_specs=[
                    pl.BlockSpec((tr, 128), lambda i: (i, 0)),
                    pl.BlockSpec((128, 128), lambda i: (0, 0)),  # stays resident
                ],
                out_specs=pl.BlockSpec((tr, 128), lambda i: (i, 0)),
            ),
            compiler_params=compiler_params,
        )(x2, seg_ones)
        out = out2.reshape(orig_shape)
    else:
        # TODO(synk): for vocab-scale feat (where even an 8-row block blows the
        # VMEM budget), tile the feature axis too with a two-pass/online softmax.
        x2 = x.reshape(rows, feat)
        tr = _pick_tile_rows(rows, feat, x.dtype, target_bytes)
        grid = (pl.cdiv(rows, tr),)
        kern = functools.partial(_tsoftmax_rowmajor_kernel, inv_T=inv_T)
        out2 = pl.pallas_call(
            kern,
            out_shape=jax.ShapeDtypeStruct((rows, feat), x2.dtype),
            grid_spec=pltpu.PrefetchScalarGridSpec(
                num_scalar_prefetch=0,
                grid=grid,
                in_specs=[pl.BlockSpec((tr, feat), lambda i: (i, 0))],
                out_specs=pl.BlockSpec((tr, feat), lambda i: (i, 0)),
            ),
            compiler_params=compiler_params,
        )(x2)
        out = out2.reshape(orig_shape)

    if perm is not None:
        inv_perm = tuple(perm.index(i) for i in range(ndim))
        out = jnp.transpose(out, inv_perm)
    return out


if __name__ == "__main__":
    T = 4.0
    key = jax.random.PRNGKey(0)
    k0, k1, k2, k3 = jax.random.split(key, 4)

    # 1) NCHW-like input, softmax over the (small) last dim -> packed path (feat=16).
    x = jax.random.normal(k0, (2, 4, 16, 16), dtype=jnp.float32)
    out = jax.block_until_ready(tsoftmax(x, T=T, dim=-1))
    ref = jax.nn.softmax(x * (1.0 / T), axis=-1)
    assert out.shape == x.shape
    assert jnp.allclose(out, ref, atol=2e-3, rtol=2e-3), "packed feat=16 mismatch"
    assert jnp.allclose(jnp.sum(out, axis=-1), 1.0, atol=5e-3)

    # 2) feat=64 -> newly-extended packed lane-dense path (MXU segment-sum).
    x64 = jax.random.normal(k1, (2, 8, 64), dtype=jnp.float32)
    out64 = jax.block_until_ready(tsoftmax(x64, T=T, dim=-1))
    ref64 = jax.nn.softmax(x64 * (1.0 / T), axis=-1)
    assert jnp.allclose(out64, ref64, atol=2e-3, rtol=2e-3), "packed feat=64 mismatch"

    # 3) Wider feature dim, non-multiple-of-8 rows -> general path, ragged grid.
    xw = jax.random.normal(k2, (3, 24, 160), dtype=jnp.float32)
    outw = jax.block_until_ready(tsoftmax(xw, T=T, dim=-1))
    refw = jax.nn.softmax(xw * (1.0 / T), axis=-1)
    assert jnp.allclose(outw, refw, atol=2e-3, rtol=2e-3), "general path mismatch"

    # 4) bf16 input (16-row sublane packing) and a non-trailing softmax dim.
    xb = jax.random.normal(k3, (4, 32, 256), dtype=jnp.bfloat16)
    outb = jax.block_until_ready(tsoftmax(xb, T=T, dim=-1))
    refb = jax.nn.softmax(xb.astype(jnp.float32) * (1.0 / T), axis=-1)
    assert jnp.allclose(outb.astype(jnp.float32), refb, atol=2e-2, rtol=2e-2), "bf16 mismatch"

    outd = jax.block_until_ready(tsoftmax(x, T=T, dim=1))
    refd = jax.nn.softmax(x * (1.0 / T), axis=1)
    assert jnp.allclose(outd, refd, atol=2e-3, rtol=2e-3), "dim=1 mismatch"

    print("KERNEL_OK")
</pallas_src>

<mosaic_0001>
module attributes {stable_mosaic.version = 11 : i64} {
  func.func @_tsoftmax_packed_kernel(%arg0: i32, %arg1: memref<16x128xf32, #tpu.memory_space<vmem>>, %arg2: memref<128x128xf32, #tpu.memory_space<vmem>>, %arg3: memref<16x128xf32, #tpu.memory_space<vmem>>) attributes {dimension_semantics = [#tpu.dimension_semantics<parallel>], iteration_bounds = array<i64: 1>, scalar_prefetch = 0 : i64, scratch_operands = 0 : i64, tpu.core_type = #tpu.core_type<tc>, window_params = [{transform_indices = @transform_0, window_bounds = array<i64: 16, 128>}, {pipeline_mode = #tpu.pipeline_mode<synchronous>, transform_indices = @transform_1, window_bounds = array<i64: 128, 128>}, {transform_indices = @transform_2, window_bounds = array<i64: 16, 128>}]} {
    %c0 = arith.constant 0 : index
    %c0_0 = arith.constant 0 : index
    %0 = vector.load %arg1[%c0, %c0_0] : memref<16x128xf32, #tpu.memory_space<vmem>>, vector<16x128xf32>
    %cst = arith.constant 2.500000e-01 : f32
    %1 = vector.broadcast %cst : f32 to vector<16x128xf32>
    %2 = arith.mulf %0, %1 : vector<16x128xf32>
    %3 = tpu.iota {dimensions = array<i32: 1>} : vector<16x128xi32>
    %c16_i32 = arith.constant 16 : i32
    %c0_i32 = arith.constant 0 : i32
    %4 = arith.cmpi eq, %c16_i32, %c0_i32 : i32
    %c1_i32 = arith.constant 1 : i32
    %5 = arith.select %4, %c1_i32, %c16_i32 : i32
    %6 = vector.broadcast %5 : i32 to vector<16x128xi32>
    %7 = arith.remsi %3, %6 : vector<16x128xi32>
    %c0_i32_1 = arith.constant 0 : i32
    %8 = vector.broadcast %c0_i32_1 : i32 to vector<16x128xi32>
    %9 = arith.cmpi ne, %7, %8 : vector<16x128xi32>
    %c0_i32_2 = arith.constant 0 : i32
    %10 = vector.broadcast %c0_i32_2 : i32 to vector<16x128xi32>
    %11 = arith.cmpi slt, %7, %10 : vector<16x128xi32>
    %c0_i32_3 = arith.constant 0 : i32
    %12 = arith.cmpi slt, %5, %c0_i32_3 : i32
    %13 = vector.broadcast %12 : i1 to vector<16x128xi1>
    %14 = vector.broadcast %13 : vector<16x128xi1> to vector<16x128xi1>
    %15 = arith.xori %11, %14 : vector<16x128xi1>
    %16 = arith.andi %15, %9 : vector<16x128xi1>
    %17 = vector.broadcast %5 : i32 to vector<16x128xi32>
    %18 = arith.addi %7, %17 : vector<16x128xi32>
    %19 = arith.select %16, %18, %7 : vector<16x128xi1>, vector<16x128xi32>
    %c127_i32 = arith.constant 127 : i32
    %20 = tpu.dynamic_rotate %2 by %c127_i32 dim 1 : vector<16x128xf32>, i32 -> vector<16x128xf32>
    %21 = arith.maximumf %2, %20 : vector<16x128xf32>
    %c126_i32 = arith.constant 126 : i32
    %22 = tpu.dynamic_rotate %21 by %c126_i32 dim 1 : vector<16x128xf32>, i32 -> vector<16x128xf32>
    %23 = arith.maximumf %21, %22 : vector<16x128xf32>
    %c124_i32 = arith.constant 124 : i32
    %24 = tpu.dynamic_rotate %23 by %c124_i32 dim 1 : vector<16x128xf32>, i32 -> vector<16x128xf32>
    %25 = arith.maximumf %23, %24 : vector<16x128xf32>
    %c120_i32 = arith.constant 120 : i32
    %26 = tpu.dynamic_rotate %25 by %c120_i32 dim 1 : vector<16x128xf32>, i32 -> vector<16x128xf32>
    %27 = arith.maximumf %25, %26 : vector<16x128xf32>
    %c1_i32_4 = arith.constant 1 : i32
    %28 = vector.broadcast %c1_i32_4 : i32 to vector<16x128xi32>
    %29 = arith.cmpi sge, %19, %28 : vector<16x128xi32>
    %c1_i32_5 = arith.constant 1 : i32
    %30 = tpu.dynamic_rotate %27 by %c1_i32_5 dim 1 : vector<16x128xf32>, i32 -> vector<16x128xf32>
    %31 = arith.select %29, %30, %27 : vector<16x128xi1>, vector<16x128xf32>
    %c2_i32 = arith.constant 2 : i32
    %32 = vector.broadcast %c2_i32 : i32 to vector<16x128xi32>
    %33 = arith.cmpi sge, %19, %32 : vector<16x128xi32>
    %c2_i32_6 = arith.constant 2 : i32
    %34 = tpu.dynamic_rotate %31 by %c2_i32_6 dim 1 : vector<16x128xf32>, i32 -> vector<16x128xf32>
    %35 = arith.select %33, %34, %31 : vector<16x128xi1>, vector<16x128xf32>
    %c4_i32 = arith.constant 4 : i32
    %36 = vector.broadcast %c4_i32 : i32 to vector<16x128xi32>
    %37 = arith.cmpi sge, %19, %36 : vector<16x128xi32>
    %c4_i32_7 = arith.constant 4 : i32
    %38 = tpu.dynamic_rotate %35 by %c4_i32_7 dim 1 : vector<16x128xf32>, i32 -> vector<16x128xf32>
    %39 = arith.select %37, %38, %35 : vector<16x128xi1>, vector<16x128xf32>
    %c8_i32 = arith.constant 8 : i32
    %40 = vector.broadcast %c8_i32 : i32 to vector<16x128xi32>
    %41 = arith.cmpi sge, %19, %40 : vector<16x128xi32>
    %c8_i32_8 = arith.constant 8 : i32
    %42 = tpu.dynamic_rotate %39 by %c8_i32_8 dim 1 : vector<16x128xf32>, i32 -> vector<16x128xf32>
    %43 = arith.select %41, %42, %39 : vector<16x128xi1>, vector<16x128xf32>
    %44 = arith.subf %2, %43 : vector<16x128xf32>
    %45 = math.exp %44 : vector<16x128xf32>
    %c0_9 = arith.constant 0 : index
    %c0_10 = arith.constant 0 : index
    %46 = vector.load %arg2[%c0_9, %c0_10] : memref<128x128xf32, #tpu.memory_space<vmem>>, vector<128x128xf32>
    %cst_11 = arith.constant dense<0.000000e+00> : vector<16x128xf32>
    %47 = tpu.matmul %45, %46, %cst_11 {dimension_numbers = #tpu.dot_dimension_numbers<[1], [0], [0], [1], [0, 0, 1, 1], [], []>} : vector<16x128xf32>, vector<128x128xf32>, vector<16x128xf32> -> vector<16x128xf32>
    %48 = tpu.reciprocal %47 {approx = true} : vector<16x128xf32> -> vector<16x128xf32>
    %49 = arith.mulf %45, %48 : vector<16x128xf32>
    %c0_12 = arith.constant 0 : index
    %c0_13 = arith.constant 0 : index
    %50 = vector.load %arg3[%c0_12, %c0_13] : memref<16x128xf32, #tpu.memory_space<vmem>>, vector<16x128xf32>
    tpu.vector_store %arg3[%c0_12, %c0_13], %49 {strides = array<i32>} : memref<16x128xf32, #tpu.memory_space<vmem>>, vector<16x128xf32>,
    return
  }
  func.func @transform_0(%arg0: i32) -> (i32, i32) {
    %c0_i32 = arith.constant 0 : i32
    %c0_i32_0 = arith.constant 0 : i32
    return %arg0, %c0_i32 : i32, i32
  }
  func.func @transform_1(%arg0: i32) -> (i32, i32) {
    %c0_i32 = arith.constant 0 : i32
    %c0_i32_0 = arith.constant 0 : i32
    %c0_i32_1 = arith.constant 0 : i32
    return %c0_i32, %c0_i32_0 : i32, i32
  }
  func.func @transform_2(%arg0: i32) -> (i32, i32) {
    %c0_i32 = arith.constant 0 : i32
    %c0_i32_0 = arith.constant 0 : i32
    return %arg0, %c0_i32 : i32, i32
  }
}

</mosaic_0001>

<bundles_post_ra>
// kernel: tpu_custom_call.1
= control target key start
LH: loop header
LB: loop body
LE: loop exit
PB: predicated region body
PF: predicated region fallthrough
CT: control target
= control target key end

     0   :  { %7 = vsyncpa [#allocation3], 0  ;;  %s362_s0 = inlined_call_operand.hbm [shape: f32[16,128], index: 0, kind: input, shape index: {}]   ;;  %s363_s1 = inlined_call_operand.hbm [shape: f32[128,128], index: 1, kind: input, shape index: {}]   ;;  %s364_s2 = inlined_call_operand.hbm [shape: f32[16,128], index: 2, kind: output, shape index: {}]  }
   0x1   :  { %8 = vsyncpa [#allocation6], 0 }
   0x2   :  { %9 = vsyncpa [#allocation4], 0  ;;  %s14_s11 = sshll.u32 %s362_s0, 4  ;;  %s299_s12 = smov [#allocation2]   ;;  %s15_s11 = int_to_ptr.hbm [resolvable:$true] %s14_s11 }
   0x3   :  { %s16_s13 = sshll.u32 %s299_s12, 4  ;;  %s27_s16 = sshll.u32 %s363_s1, 4  ;;  %s17_s13 = int_to_ptr.vmem [resolvable:$true] %s16_s13  ;;  %s28_s16 = int_to_ptr.hbm [resolvable:$true] %s27_s16 }
   0x4   :  { %s300_s17 = smov 128   ;;  %s301_s18 = smov 8  }
   0x5   :  { %22 = dma.hbm_to_vmem [thread:$0]  %s15_s11, 256, %s17_s13, [#allocation3], %s300_s17, %s300_s17, %s301_s18  }
   0x6   :  { %s302_s19 = smov [#allocation5]  }
   0x7   :  { %s29_s20 = sshll.u32 %s302_s19, 4  ;;  %s30_s20 = int_to_ptr.vmem [resolvable:$true] %s29_s20 }
   0x8   :  { %35 = dma.hbm_to_vmem [thread:$0]  %s28_s16, 2048, %s30_s20, [#allocation6], %s300_s17, %s300_s17, %s301_s18  }
   0x9   :  { %293 = dma.done.wait [#allocation3], 256  }
   0xa   :  { %294 = vsyncadd [#allocation3], 4294967040 }
   0xb   :  { %295 = dma.done.wait [#allocation6], 2048  }
   0xc   :  { %296 = vsyncadd [#allocation6], 4294965248  ;;  %v44_v0 = vld [vmem:[#allocation2] sm:$0xff]  ;;  %s303_s0 = smov 127   ;;  %v45_v2 = vld [vmem:[#allocation2 + $0x8] sm:$0xff]  ;;  %s304_s1 = smov 126   ;;  %v48_v20 = vlaneseq }
   0xd   :  { %v338_v1 = vmul.f32 0.25, %v44_v0  ;;  %v341_v3 = vmul.f32 0.25, %v45_v2  ;;  %s305_s21 = smov 124   ;;  %s306_s22 = smov 120   ;;  %v135_v31 = vld [vmem:[#allocation5 + $0x78] sm:$0xff]  ;;  %v134_v32 = vld [vmem:[#allocation5 + $0x70] sm:$0xff] }
   0xe   :  { %s307_s23 = smov 1   ;;  %v49_v21 = vand.u32 127, %v48_v20  ;;  %s308_s24 = smov 2   ;;  %136 = vmatpush.msra.mxu0 %v135_v31  ;;  %185 = vmatpush.msra.mxu1 %v135_v31  ;;  %v133_v33 = vld [vmem:[#allocation5 + $0x68] sm:$0xff]  ;;  %v132_v34 = vld [vmem:[#allocation5 + $0x60] sm:$0xff]  ;;  %v131_v35 = vld [vmem:[#allocation5 + $0x58] sm:$0xff] }
   0xf   :  { %62 = vrot.lane.b32.xlu0 %v338_v1, %s303_s0  ;;  %s309_s25 = smov 4   ;;  %v130_v36 = vld [vmem:[#allocation5 + $0x50] sm:$0xff]  ;;  %v129_v37 = vld [vmem:[#allocation5 + $0x48] sm:$0xff]  ;;  %v128_v38 = vld [vmem:[#allocation5 + $0x40] sm:$0xff]  ;;  %s310_s26 = smov [#allocation7]  }
  0x10   :  { %v346_v22 = vand.u32 15, %v49_v21  ;;  %137 = vmatpush.msra.mxu0 %v134_v32  ;;  %186 = vmatpush.msra.mxu1 %v134_v32  ;;  %v127_v39 = vld [vmem:[#allocation5 + $0x38] sm:$0xff]  ;;  %v126_v40 = vld [vmem:[#allocation5 + $0x30] sm:$0xff]  ;;  %v125_v45 = vld [vmem:[#allocation5 + $0x28] sm:$0xff]  ;;  %s169_s27 = sshll.u32 %s310_s26, 4  ;;  %s171_s30 = sshll.u32 %s364_s2, 4  ;;  %s170_s27 = int_to_ptr.vmem [resolvable:$true] %s169_s27  ;;  %s172_s30 = int_to_ptr.hbm [resolvable:$true] %s171_s30 }
  0x11   :  { %v124_v46 = vld [vmem:[#allocation5 + $0x20] sm:$0xff]  ;;  %v123_v47 = vld [vmem:[#allocation5 + $0x18] sm:$0xff]  ;;  %v122_v48 = vld [vmem:[#allocation5 + $0x10] sm:$0xff] }
  0x12   :  { %vm86_vm0 = vcmp.ge.s32.totalorder %v346_v22, 1  ;;  %vm93_vm1 = vcmp.ge.s32.totalorder %v346_v22, 2  ;;  %138 = vmatpush.msra.mxu0 %v133_v33  ;;  %187 = vmatpush.msra.mxu1 %v133_v33  ;;  %vm100_vm2 = vcmp.ge.s32.totalorder %v346_v22, 4  ;;  %v121_v49 = vld [vmem:[#allocation5 + $0x8] sm:$0xff]  ;;  %v120_v50 = vld [vmem:[#allocation5] sm:$0xff]  ;;  %vm107_vm3 = vcmp.ge.s32.totalorder %v346_v22, 8 }
  0x14   :  { %139 = vmatpush.msra.mxu0 %v132_v34  ;;  %188 = vmatpush.msra.mxu1 %v132_v34 }
  0x16   :  { %140 = vmatpush.msra.mxu0 %v131_v35  ;;  %189 = vmatpush.msra.mxu1 %v131_v35 }
  0x17   :  { %64 = vrot.lane.b32.xlu0 %v341_v3, %s303_s0 }
  0x18   :  { %141 = vmatpush.msra.mxu0 %v130_v36  ;;  %190 = vmatpush.msra.mxu1 %v130_v36 }
  0x1a   :  { %142 = vmatpush.msra.mxu0 %v129_v37  ;;  %191 = vmatpush.msra.mxu1 %v129_v37 }
  0x1c   :  { %143 = vmatpush.msra.mxu0 %v128_v38  ;;  %192 = vmatpush.msra.mxu1 %v128_v38 }
  0x1e   :  { %144 = vmatpush.msra.mxu0 %v127_v39  ;;  %193 = vmatpush.msra.mxu1 %v127_v39 }
  0x20   :  { %145 = vmatpush.msra.mxu0 %v126_v40  ;;  %194 = vmatpush.msra.mxu1 %v126_v40 }
  0x22   :  { %146 = vmatpush.msra.mxu0 %v125_v45  ;;  %195 = vmatpush.msra.mxu1 %v125_v45 }
  0x24   :  { %147 = vmatpush.msra.mxu0 %v124_v46  ;;  %196 = vmatpush.msra.mxu1 %v124_v46 }
  0x26   :  { %148 = vmatpush.msra.mxu0 %v123_v47  ;;  %197 = vmatpush.msra.mxu1 %v123_v47 }
  0x28   :  { %149 = vmatpush.msra.mxu0 %v122_v48  ;;  %198 = vmatpush.msra.mxu1 %v122_v48 }
  0x2a   :  { %150 = vmatpush.msra.mxu0 %v121_v49  ;;  %199 = vmatpush.msra.mxu1 %v121_v49 }
  0x2c   :  { %151 = vmatpush.msra.mxu0 %v120_v50  ;;  %200 = vmatpush.msra.mxu1 %v120_v50 }
  0x81   :  { %v63_v4 = vpop.permute.xlu0 %62 }
  0x82   :  { %v66_v5 = vmax.f32 %v338_v1, %v63_v4 }
  0x84   :  { %68 = vrot.lane.b32.xlu1 %v66_v5, %s304_s1 }
  0x89   :  { %v65_v6 = vpop.permute.xlu0 %64 }
  0x8a   :  { %v67_v7 = vmax.f32 %v341_v3, %v65_v6 }
  0x8c   :  { %70 = vrot.lane.b32.xlu1 %v67_v7, %s304_s1 }
  0xf6   :  { %v69_v8 = vpop.permute.xlu1 %68 }
  0xf7   :  { %v72_v9 = vmax.f32 %v66_v5, %v69_v8 }
  0xf9   :  { %74 = vrot.lane.b32.xlu2 %v72_v9, %s305_s21 }
  0xfe   :  { %v71_v10 = vpop.permute.xlu1 %70 }
  0xff   :  { %v73_v11 = vmax.f32 %v67_v7, %v71_v10 }
 0x101   :  { %76 = vrot.lane.b32.xlu2 %v73_v11, %s305_s21 }
 0x153   :  { %v75_v12 = vpop.permute.xlu2 %74 }
 0x154   :  { %v78_v13 = vmax.f32 %v72_v9, %v75_v12 }
 0x156   :  { %80 = vrot.lane.b32.xlu0 %v78_v13, %s306_s22 }
 0x15b   :  { %v77_v14 = vpop.permute.xlu2 %76 }
 0x15c   :  { %v79_v15 = vmax.f32 %v73_v11, %v77_v14 }
 0x15e   :  { %82 = vrot.lane.b32.xlu1 %v79_v15, %s306_s22 }
 0x1c8   :  { %v81_v16 = vpop.permute.xlu0 %80 }
 0x1c9   :  { %v84_v17 = vmax.f32 %v78_v13, %v81_v16 }
 0x1cb   :  { %87 = vrot.lane.b32.xlu2 %v84_v17, %s307_s23 }
 0x1d0   :  { %v83_v18 = vpop.permute.xlu1 %82 }
 0x1d1   :  { %v85_v19 = vmax.f32 %v79_v15, %v83_v18 }
 0x1d3   :  { %89 = vrot.lane.b32.xlu0 %v85_v19, %s307_s23 }
 0x225   :  { %v88_v23 = vpop.permute.xlu2 %87 }
 0x226   :  { %v91_v24 = vsel %vm86_vm0, %v88_v23, %v84_v17 }
 0x227   :  { %94 = vrot.lane.b32.xlu1 %v91_v24, %s308_s24 }
 0x245   :  { %v90_v25 = vpop.permute.xlu0 %89 }
 0x246   :  { %v92_v26 = vsel %vm86_vm0, %v90_v25, %v85_v19 }
 0x247   :  { %96 = vrot.lane.b32.xlu2 %v92_v26, %s308_s24 }
 0x299   :  { %v95_v27 = vpop.permute.xlu1 %94 }
 0x29a   :  { %v98_v28 = vsel %vm93_vm1, %v95_v27, %v91_v24 }
 0x29b   :  { %101 = vrot.lane.b32.xlu0 %v98_v28, %s309_s25 }
 0x2a1   :  { %v97_v29 = vpop.permute.xlu2 %96 }
 0x2a2   :  { %v99_v30 = vsel %vm93_vm1, %v97_v29, %v92_v26 }
 0x2a3   :  { %103 = vrot.lane.b32.xlu1 %v99_v30, %s309_s25 }
 0x30d   :  { %v102_v41 = vpop.permute.xlu0 %101 }
 0x30e   :  { %v105_v42 = vsel %vm100_vm2, %v102_v41, %v98_v28 }
 0x30f   :  { %108 = vrot.lane.b32.xlu2 %v105_v42, %s301_s18 }
 0x315   :  { %v104_v43 = vpop.permute.xlu1 %103 }
 0x316   :  { %v106_v44 = vsel %vm100_vm2, %v104_v43, %v99_v30 }
 0x317   :  { %110 = vrot.lane.b32.xlu0 %v106_v44, %s301_s18 }
 0x369   :  { %v109_v51 = vpop.permute.xlu2 %108 }
 0x36a   :  { %v112_v52 = vsel %vm107_vm3, %v109_v51, %v105_v42 }
 0x36b   :  { %v114_v53 = vsub.f32 %v338_v1, %v112_v52 }
 0x36d   :  { %v116_v54 = vmul.f32 1.442695, %v114_v53 }
 0x36f   :  { %213 = vpow2.f32 %v116_v54 }
 0x375   :  { %v214_v55 = vpop.eup %213 }
 0x376   :  { %152 = vmatmul.f32.vlgmr.msra.gmra.mxu0 %v214_v55 }
 0x389   :  { %v111_v56 = vpop.permute.xlu0 %110 }
 0x38a   :  { %v113_v57 = vsel %vm107_vm3, %v111_v56, %v106_v44 }
 0x38b   :  { %v115_v58 = vsub.f32 %v341_v3, %v113_v57 }
 0x38d   :  { %v118_v59 = vmul.f32 1.442695, %v115_v58 }
 0x38f   :  { %215 = vpow2.f32 %v118_v59 }
 0x395   :  { %v216_v60 = vpop.eup %215 }
 0x396   :  { %155 = vmatmul.f32.vlgmr.msra.gmra.mxu1 %v216_v60 }
 0x3f3   :  { %v153_v61 = vpop.f32.mrf.mxu0 }
 0x3f4   :  { %217 = vrcp.f32 %v153_v61 }
 0x3fa   :  { %v218_v62 = vpop.eup %217 }
 0x3fb   :  { %v161_v63 = vmul.f32 %v218_v62, %v214_v55 }
 0x3fd   :  { %163 = vst [vmem:[#allocation7] sm:$0xff] %v161_v63 }
 0x413   :  { %v156_v0 = vpop.f32.mrf.mxu1 }
 0x414   :  { %219 = vrcp.f32 %v156_v0 }
 0x41a   :  { %v220_v1 = vpop.eup %219 }
 0x41b   :  { %v162_v2 = vmul.f32 %v220_v1, %v216_v60 }
 0x41d   :  { %164 = vst [vmem:[#allocation7 + $0x8] sm:$0xff] %v162_v2 }
 0x41e   :  { %177 = dma.vmem_to_hbm [thread:$0]  %s170_s27, 256, %s172_s30, [#allocation4], %s300_s17, %s300_s17, %s301_s18  }
 0x41f   :  { %297 = dma.done.wait [#allocation4], 256  }
 0x420   :  { %298 = vsyncadd [#allocation4], 4294967040 }
 0x421   :  { %182 = vsyncpa [#allocation3], 1 }
 0x422   :  { %183 = vsyncpa [#allocation6], 1 }
 0x423   :  { %184 = vsyncpa [#allocation4], 1 }

</bundles_post_ra>
